<compile_context>
chip_gen: v6e
topology: v6e:2x2x1
jax: 0.10.0
libtpu: 0.0.40
codegen_flags: <defaults>
</compile_context>

<pallas_src>
import functools

import jax
import jax.numpy as jnp
from jax.experimental import pallas as pl
from jax.experimental.pallas import tpu as pltpu


def _cdiv(a, b):
    return -(-a // b)


def _round_up(x, m):
    return ((x + m - 1) // m) * m


def _mlp_kernel_t(x_ref, w1_ref, b1_ref, w2_ref, b2_ref, w3_ref, b3_ref, out_ref,
                  *, precision):
    """Transposed MLP: x_ref is (obs_dim, tb), out_ref is (act_num, tb); batch on lanes."""
    compute_dtype = w1_ref.dtype
    # Layer 1: (h1, obs_dim) @ (obs_dim, tb) -> f32 (h1, tb); bias/ReLU in f32.
    h = jnp.dot(w1_ref[...], x_ref[...],
                preferred_element_type=jnp.float32, precision=precision)
    h = jnp.maximum(h + b1_ref[...], 0.0)
    # Layer 2: cast only the matmul operand back to the MXU compute dtype.
    h = jnp.dot(w2_ref[...], h.astype(compute_dtype),
                preferred_element_type=jnp.float32, precision=precision)
    h = jnp.maximum(h + b2_ref[...], 0.0)
    # Output layer: Linear + Identity.  Lane-dense store (last dim = tb).
    q = jnp.dot(w3_ref[...], h.astype(compute_dtype),
                preferred_element_type=jnp.float32, precision=precision)
    out_ref[...] = (q + b3_ref[...]).astype(out_ref.dtype)


def action_value_dis_forward(obs, params, *, batch_tile=2048, compute_dtype=jnp.bfloat16):
    """Fused MLP forward.

    obs: (B, obs_dim) f32.  params: dict with w1/b1/w2/b2/w3/b3, weights PyTorch-native
    (out_features, in_features), biases (out_features,).  Returns (B, act_num) f32.
    """
    w1, b1, w2, b2, w3, b3 = (
        params["w1"], params["b1"], params["w2"],
        params["b2"], params["w3"], params["b3"],
    )
    B, obs_dim = obs.shape
    h1 = w1.shape[0]
    h2 = w2.shape[0]
    act_num = w3.shape[0]

    exact_f32 = jnp.dtype(compute_dtype) == jnp.dtype(jnp.float32)
    precision = jax.lax.Precision.HIGHEST if exact_f32 else jax.lax.Precision.DEFAULT

    # (features, batch) orientation: batch lands on lanes.  Activations/weights go to the
    # MXU compute dtype (intentional quantization in the bf16 path); biases stay f32 and
    # are added to the f32 accumulator as (out, 1) lane-broadcast columns.
    obs_t = obs.T.astype(compute_dtype)                       # (obs_dim, B)
    w1_c, w2_c, w3_c = (w.astype(compute_dtype) for w in (w1, w2, w3))
    b1_f, b2_f, b3_f = (b.reshape(-1, 1).astype(jnp.float32) for b in (b1, b2, b3))

    # Balanced batch tiling on the lane axis (128-aligned), even grid for v7x megacore.
    LANE = 128
    n = max(1, _cdiv(B, batch_tile))
    if n > 1 and n % 2:
        n += 1                                                # even grid -> both TCs get equal work
    tb = _round_up(_cdiv(B, n), LANE)
    padded_b = n * tb
    if padded_b != B:
        obs_t = jnp.pad(obs_t, ((0, 0), (0, padded_b - B)))   # zero tail columns (sliced off below)
    grid = (n,)

    # VMEM budget: double-buffered obs/out tiles + single-buffered resident params,
    # plus headroom for compiler scratch.  Total footprint is well under 1 MiB, so the
    # same budget serves v5e/v6e (128 MiB) and v7x (64 MiB).
    itemsize = jnp.dtype(compute_dtype).itemsize
    tile_bytes = 2 * tb * obs_dim * itemsize + 2 * tb * act_num * 4
    weight_bytes = (h1 * obs_dim + h2 * h1 + act_num * h2) * itemsize
    bias_bytes = (h1 + h2 + act_num) * 4
    vmem_limit = int(min(32 * 1024 * 1024,
                         max(4 * 1024 * 1024,
                             2 * (tile_bytes + weight_bytes + bias_bytes) + (2 << 20))))

    # Resident operands: constant index_map + single pipeline buffer (never change).
    def resident(a):
        return pl.BlockSpec(a.shape, lambda i: (0, 0), pipeline_mode=pl.Buffered(1))

    kernel = functools.partial(_mlp_kernel_t, precision=precision)

    out_t = pl.pallas_call(
        kernel,
        out_shape=jax.ShapeDtypeStruct((act_num, padded_b), jnp.float32),
        grid=grid,
        in_specs=[
            pl.BlockSpec((obs_dim, tb), lambda i: (0, i)),    # streamed batch tile (lanes)
            resident(w1_c), resident(b1_f),
            resident(w2_c), resident(b2_f),
            resident(w3_c), resident(b3_f),
        ],
        out_specs=pl.BlockSpec((act_num, tb), lambda i: (0, i)),
        compiler_params=pltpu.CompilerParams(
            dimension_semantics=("parallel",),                # shard batch grid across TCs
            vmem_limit_bytes=vmem_limit,
        ),
    )(obs_t, w1_c, b1_f, w2_c, b2_f, w3_c, b3_f)

    # Cheap wrapper-side slice + transpose of a tiny (act_num, B) slab back to (B, act_num).
    return out_t[:, :B].T


def init_params(key, obs_dim, hidden_sizes, act_num):
    """uniform(-1/sqrt(fan_in), 1/sqrt(fan_in)) init, PyTorch nn.Linear layout (out, in)."""
    sizes = [obs_dim] + list(hidden_sizes) + [act_num]
    params = {}
    for i in range(len(sizes) - 1):
        fan_in, fan_out = sizes[i], sizes[i + 1]
        key, kw, kb = jax.random.split(key, 3)
        bound = 1.0 / jnp.sqrt(jnp.float32(fan_in))
        params[f"w{i + 1}"] = jax.random.uniform(
            kw, (fan_out, fan_in), jnp.float32, -bound, bound
        )
        params[f"b{i + 1}"] = jax.random.uniform(
            kb, (fan_out,), jnp.float32, -bound, bound
        )
    return params


def _reference_forward(obs, params):
    p = jax.lax.Precision.HIGHEST
    h = jnp.maximum(jnp.dot(obs, params["w1"].T, precision=p) + params["b1"], 0.0)
    h = jnp.maximum(jnp.dot(h, params["w2"].T, precision=p) + params["b2"], 0.0)
    return jnp.dot(h, params["w3"].T, precision=p) + params["b3"]


if __name__ == "__main__":
    key = jax.random.PRNGKey(0)

    # Shapes consistent with the module: obs_dim=16, hidden_sizes=(32, 32), act_num=4.
    batch, obs_dim, hidden_sizes, act_num = 2, 16, (32, 32), 4

    key, k_obs, k_par, k_big = jax.random.split(key, 4)
    obs = jax.random.normal(k_obs, (batch, obs_dim), jnp.float32)
    params = init_params(k_par, obs_dim, hidden_sizes, act_num)
    q_ref = _reference_forward(obs, params)

    # 1) Exact-semantics path (f32 compute, precision=HIGHEST) at the small RL shape.
    q_f32 = jax.block_until_ready(
        action_value_dis_forward(obs, params, compute_dtype=jnp.float32)
    )
    assert q_f32.shape == (batch, act_num)
    assert jnp.allclose(q_f32, q_ref, atol=1e-5, rtol=1e-5)

    # 2) Performance path (bf16 activations/weights, f32 accumulate) — looser tolerance.
    q_bf16 = jax.block_until_ready(action_value_dis_forward(obs, params))
    assert q_bf16.shape == (batch, act_num)
    assert jnp.allclose(q_bf16, q_ref, atol=5e-2, rtol=5e-2)

    # 3) Exercise the multi-tile batch grid (even grid, balanced ragged tail).
    big_B = 5000  # cdiv(5000, 2048)=3 -> rounded to 4 tiles of 1280 rows (2.4% padding)
    obs_big = jax.random.normal(k_big, (big_B, obs_dim), jnp.float32)
    q_big = jax.block_until_ready(
        action_value_dis_forward(obs_big, params, batch_tile=2048)
    )
    q_big_ref = _reference_forward(obs_big, params)
    assert q_big.shape == (big_B, act_num)
    assert jnp.allclose(q_big, q_big_ref, atol=5e-2, rtol=5e-2)

    print("KERNEL_OK")
</pallas_src>

<mosaic_0001>
module attributes {stable_mosaic.version = 11 : i64} {
  func.func @_mlp_kernel_t(%arg0: i32, %arg1: memref<16x128xf32, #tpu.memory_space<vmem>>, %arg2: memref<32x16xf32, #tpu.memory_space<vmem>>, %arg3: memref<32x1xf32, #tpu.memory_space<vmem>>, %arg4: memref<32x32xf32, #tpu.memory_space<vmem>>, %arg5: memref<32x1xf32, #tpu.memory_space<vmem>>, %arg6: memref<4x32xf32, #tpu.memory_space<vmem>>, %arg7: memref<4x1xf32, #tpu.memory_space<vmem>>, %arg8: memref<4x128xf32, #tpu.memory_space<vmem>>) attributes {dimension_semantics = [#tpu.dimension_semantics<parallel>], iteration_bounds = array<i64: 1>, scalar_prefetch = 0 : i64, scratch_operands = 0 : i64, tpu.core_type = #tpu.core_type<tc>, window_params = [{transform_indices = @transform_0, window_bounds = array<i64: 16, 128>}, {pipeline_mode = #tpu.pipeline_mode<synchronous>, transform_indices = @transform_1, window_bounds = array<i64: 32, 16>}, {pipeline_mode = #tpu.pipeline_mode<synchronous>, transform_indices = @transform_2, window_bounds = array<i64: 32, 1>}, {pipeline_mode = #tpu.pipeline_mode<synchronous>, transform_indices = @transform_3, window_bounds = array<i64: 32, 32>}, {pipeline_mode = #tpu.pipeline_mode<synchronous>, transform_indices = @transform_4, window_bounds = array<i64: 32, 1>}, {pipeline_mode = #tpu.pipeline_mode<synchronous>, transform_indices = @transform_5, window_bounds = array<i64: 4, 32>}, {pipeline_mode = #tpu.pipeline_mode<synchronous>, transform_indices = @transform_6, window_bounds = array<i64: 4, 1>}, {transform_indices = @transform_7, window_bounds = array<i64: 4, 128>}]} {
    %c0 = arith.constant 0 : index
    %c0_0 = arith.constant 0 : index
    %0 = vector.load %arg2[%c0, %c0_0] : memref<32x16xf32, #tpu.memory_space<vmem>>, vector<32x16xf32>
    %c0_1 = arith.constant 0 : index
    %c0_2 = arith.constant 0 : index
    %1 = vector.load %arg1[%c0_1, %c0_2] : memref<16x128xf32, #tpu.memory_space<vmem>>, vector<16x128xf32>
    %cst = arith.constant dense<0.000000e+00> : vector<32x128xf32>
    %2 = tpu.matmul %0, %1, %cst {dimension_numbers = #tpu.dot_dimension_numbers<[1], [0], [0], [1], [0, 0, 1, 1], [], []>, precision = #tpu.contract_precision<fp32>} : vector<32x16xf32>, vector<16x128xf32>, vector<32x128xf32> -> vector<32x128xf32>
    %c0_3 = arith.constant 0 : index
    %c0_4 = arith.constant 0 : index
    %3 = vector.load %arg3[%c0_3, %c0_4] : memref<32x1xf32, #tpu.memory_space<vmem>>, vector<32x1xf32>
    %4 = vector.broadcast %3 : vector<32x1xf32> to vector<32x128xf32>
    %5 = arith.addf %2, %4 : vector<32x128xf32>
    %cst_5 = arith.constant 0.000000e+00 : f32
    %6 = vector.broadcast %cst_5 : f32 to vector<32x128xf32>
    %7 = arith.maximumf %5, %6 : vector<32x128xf32>
    %c0_6 = arith.constant 0 : index
    %c0_7 = arith.constant 0 : index
    %8 = vector.load %arg4[%c0_6, %c0_7] : memref<32x32xf32, #tpu.memory_space<vmem>>, vector<32x32xf32>
    %cst_8 = arith.constant dense<0.000000e+00> : vector<32x128xf32>
    %9 = tpu.matmul %8, %7, %cst_8 {dimension_numbers = #tpu.dot_dimension_numbers<[1], [0], [0], [1], [0, 0, 1, 1], [], []>, precision = #tpu.contract_precision<fp32>} : vector<32x32xf32>, vector<32x128xf32>, vector<32x128xf32> -> vector<32x128xf32>
    %c0_9 = arith.constant 0 : index
    %c0_10 = arith.constant 0 : index
    %10 = vector.load %arg5[%c0_9, %c0_10] : memref<32x1xf32, #tpu.memory_space<vmem>>, vector<32x1xf32>
    %11 = vector.broadcast %10 : vector<32x1xf32> to vector<32x128xf32>
    %12 = arith.addf %9, %11 : vector<32x128xf32>
    %cst_11 = arith.constant 0.000000e+00 : f32
    %13 = vector.broadcast %cst_11 : f32 to vector<32x128xf32>
    %14 = arith.maximumf %12, %13 : vector<32x128xf32>
    %c0_12 = arith.constant 0 : index
    %c0_13 = arith.constant 0 : index
    %15 = vector.load %arg6[%c0_12, %c0_13] : memref<4x32xf32, #tpu.memory_space<vmem>>, vector<4x32xf32>
    %cst_14 = arith.constant dense<0.000000e+00> : vector<4x128xf32>
    %16 = tpu.matmul %15, %14, %cst_14 {dimension_numbers = #tpu.dot_dimension_numbers<[1], [0], [0], [1], [0, 0, 1, 1], [], []>, precision = #tpu.contract_precision<fp32>} : vector<4x32xf32>, vector<32x128xf32>, vector<4x128xf32> -> vector<4x128xf32>
    %c0_15 = arith.constant 0 : index
    %c0_16 = arith.constant 0 : index
    %17 = vector.load %arg7[%c0_15, %c0_16] : memref<4x1xf32, #tpu.memory_space<vmem>>, vector<4x1xf32>
    %18 = vector.broadcast %17 : vector<4x1xf32> to vector<4x128xf32>
    %19 = arith.addf %16, %18 : vector<4x128xf32>
    %c0_17 = arith.constant 0 : index
    %c0_18 = arith.constant 0 : index
    %20 = vector.load %arg8[%c0_17, %c0_18] : memref<4x128xf32, #tpu.memory_space<vmem>>, vector<4x128xf32>
    tpu.vector_store %arg8[%c0_17, %c0_18], %19 {strides = array<i32>} : memref<4x128xf32, #tpu.memory_space<vmem>>, vector<4x128xf32>,
    return
  }
  func.func @transform_0(%arg0: i32) -> (i32, i32) {
    %c0_i32 = arith.constant 0 : i32
    %c0_i32_0 = arith.constant 0 : i32
    return %c0_i32, %arg0 : i32, i32
  }
  func.func @transform_1(%arg0: i32) -> (i32, i32) {
    %c0_i32 = arith.constant 0 : i32
    %c0_i32_0 = arith.constant 0 : i32
    %c0_i32_1 = arith.constant 0 : i32
    return %c0_i32, %c0_i32_0 : i32, i32
  }
  func.func @transform_2(%arg0: i32) -> (i32, i32) {
    %c0_i32 = arith.constant 0 : i32
    %c0_i32_0 = arith.constant 0 : i32
    %c0_i32_1 = arith.constant 0 : i32
    return %c0_i32, %c0_i32_0 : i32, i32
  }
  func.func @transform_3(%arg0: i32) -> (i32, i32) {
    %c0_i32 = arith.constant 0 : i32
    %c0_i32_0 = arith.constant 0 : i32
    %c0_i32_1 = arith.constant 0 : i32
    return %c0_i32, %c0_i32_0 : i32, i32
  }
  func.func @transform_4(%arg0: i32) -> (i32, i32) {
    %c0_i32 = arith.constant 0 : i32
    %c0_i32_0 = arith.constant 0 : i32
    %c0_i32_1 = arith.constant 0 : i32
    return %c0_i32, %c0_i32_0 : i32, i32
  }
  func.func @transform_5(%arg0: i32) -> (i32, i32) {
    %c0_i32 = arith.constant 0 : i32
    %c0_i32_0 = arith.constant 0 : i32
    %c0_i32_1 = arith.constant 0 : i32
    return %c0_i32, %c0_i32_0 : i32, i32
  }
  func.func @transform_6(%arg0: i32) -> (i32, i32) {
    %c0_i32 = arith.constant 0 : i32
    %c0_i32_0 = arith.constant 0 : i32
    %c0_i32_1 = arith.constant 0 : i32
    return %c0_i32, %c0_i32_0 : i32, i32
  }
  func.func @transform_7(%arg0: i32) -> (i32, i32) {
    %c0_i32 = arith.constant 0 : i32
    %c0_i32_0 = arith.constant 0 : i32
    return %c0_i32, %arg0 : i32, i32
  }
}

</mosaic_0001>

<bundles_post_ra>
// kernel: tpu_custom_call.1
= control target key start
LH: loop header
LB: loop body
LE: loop exit
PB: predicated region body
PF: predicated region fallthrough
CT: control target
= control target key end

     0   :  { %vm57_vm0 = vcmask 130048   ;;  %v2183_v9 = vmov 0   ;;  %s2508_s0 = inlined_call_operand.vmem [shape: f32[16,128], index: 0, kind: input, shape index: {}]   ;;  %s2509_s1 = inlined_call_operand.vmem [shape: f32[32,16], index: 1, kind: input, shape index: {}]   ;;  %s2510_s2 = inlined_call_operand.vmem [shape: f32[32,1], index: 2, kind: input, shape index: {}]   ;;  %s2511_s3 = inlined_call_operand.vmem [shape: f32[32,32], index: 3, kind: input, shape index: {}]   ;;  %s2512_s4 = inlined_call_operand.vmem [shape: f32[32,1], index: 4, kind: input, shape index: {}]   ;;  %s2513_s5 = inlined_call_operand.vmem [shape: f32[4,32], index: 5, kind: input, shape index: {}]   ;;  %s2514_s6 = inlined_call_operand.vmem [shape: f32[4,1], index: 6, kind: input, shape index: {}]   ;;  %s2515_s7 = inlined_call_operand.hbm [shape: f32[4,128], index: 7, kind: output, shape index: {}]  }
   0x1   :  { %v32_v0 = vld [vmem:[%s2508_s0 + $0x8] sm:$0xff]  ;;  %v31_v1 = vld [vmem:[%s2508_s0] sm:$0xff]  ;;  %v29_v7 = vld [vmem:[%s2509_s1 + $0x10] sm:$0xff]  ;;  %2159 = vset.pattern.permute.xlu0 %v2183_v9  ;;  %2160 = vset.pattern.permute.xlu1 %v2183_v9 }
   0x2   :  { %v27_v2 = vld [vmem:[%s2509_s1] sm:$0xff]  ;;  %v2236_v3 = vand.u32 4294901760, %v32_v0  ;;  %v2238_v4 = vand.u32 4294901760, %v31_v1  ;;  %v28_v6 = vld [vmem:[%s2509_s1 + $0x8] sm:$0xff]  ;;  %v30_v8 = vld [vmem:[%s2509_s1 + $0x18] sm:$0xff]  ;;  %v65_v12 = vsel %vm57_vm0, %v29_v7, 0 }
   0x3   :  { %v59_v5 = vsel %vm57_vm0, %v27_v2, 0  ;;  %v62_v11 = vsel %vm57_vm0, %v28_v6, 0  ;;  %v68_v13 = vsel %vm57_vm0, %v30_v8, 0  ;;  %v36_v14 = vld [vmem:[%s2510_s2 + $0x18] sm:$0xff]  ;;  %v2259_v18 = vand.u32 4294901760, %v65_v12  ;;  %v34_v19 = vld [vmem:[%s2510_s2 + $0x8] sm:$0xff] }
   0x4   :  { %v2249_v10 = vand.u32 4294901760, %v59_v5  ;;  %1945 = vmatprep.subr.mxu0 %v2236_v3  ;;  %v207_v15 = vsub.f32 %v32_v0, %v2236_v3  ;;  %v2256_v16 = vand.u32 4294901760, %v62_v11  ;;  %v214_v17 = vsub.f32 %v31_v1, %v2238_v4  ;;  %54 = vperm.xlu0 %2159, %v36_v14   ;;  %v35_v22 = vld [vmem:[%s2510_s2 + $0x10] sm:$0xff] }
   0x5   :  { %1946 = vmatpush3.msra.mxu0 %v2236_v3  ;;  %v2267_v21 = vand.u32 4294901760, %v68_v13  ;;  %v158_v26 = vsub.f32 %v65_v12, %v2259_v18  ;;  %44 = vperm.xlu1 %2160, %v34_v19  }
   0x6   :  { %v138_v20 = vsub.f32 %v59_v5, %v2249_v10  ;;  %1959 = vmatprep.mubr.f32.mxu1 %v2249_v10  ;;  %1947 = vmatprep.subr.mxu0 %v2238_v4  ;;  %v208_v23 = vand.u32 4294901760, %v207_v15  ;;  %v148_v24 = vsub.f32 %v62_v11, %v2256_v16  ;;  %v215_v25 = vand.u32 4294901760, %v214_v17 }
   0x7   :  { %12 = vsyncpa [#allocation3], 0  ;;  %1948 = vmatpush3.msra.mxu0 %v2238_v4  ;;  %v168_v28 = vsub.f32 %v68_v13, %v2267_v21  ;;  %v33_v29 = vld [vmem:[%s2510_s2] sm:$0xff]  ;;  %v159_v33 = vand.u32 4294901760, %v158_v26  ;;  %v669_v36 = vld [vmem:[%s2512_s4 + $0x18] sm:$0xff]  ;;  %vm690_vm1 = vcmask 261120  }
   0x8   :  { %v139_v27 = vand.u32 4294901760, %v138_v20  ;;  %v209_v30 = vsub.f32 %v207_v15, %v208_v23  ;;  %v149_v31 = vand.u32 4294901760, %v148_v24  ;;  %v216_v32 = vsub.f32 %v214_v17, %v215_v25  ;;  %1965 = vmatprep.subr.mxu0 %v207_v15  ;;  %49 = vperm.xlu0 %2159, %v35_v22   ;;  %v667_v46 = vld [vmem:[%s2512_s4 + $0x8] sm:$0xff]  ;;  %v668_v47 = vld [vmem:[%s2512_s4 + $0x10] sm:$0xff]  ;;  %v1322_v48 = vld [vmem:[%s2514_s6] sm:$0xf] }
   0x9   :  { %v169_v35 = vand.u32 4294901760, %v168_v28  ;;  %v160_v40 = vsub.f32 %v158_v26, %v159_v33  ;;  %39 = vperm.xlu1 %2160, %v33_v29   ;;  %v666_v49 = vld [vmem:[%s2512_s4] sm:$0xff]  ;;  %v663_v12 = vld [vmem:[%s2511_s3 + $0x8] sm:$0xff]  ;;  %vm2185_vm2 = vmmov 0  }
   0xa   :  { %v140_v34 = vsub.f32 %v138_v20, %v139_v27  ;;  %v210_v37 = vand.u32 4294901760, %v209_v30  ;;  %v150_v38 = vsub.f32 %v148_v24, %v149_v31  ;;  %v217_v39 = vand.u32 4294901760, %v216_v32  ;;  %v662_v50 = vld [vmem:[%s2511_s3] sm:$0xff]  ;;  %v665_v30 = vld [vmem:[%s2511_s3 + $0x18] sm:$0xff] }
   0xb   :  { %v170_v42 = vsub.f32 %v168_v28, %v169_v35  ;;  %v161_v44 = vand.u32 4294901760, %v160_v40  ;;  %v692_v51 = vsel %vm690_vm1, %v662_v50, 0  ;;  %v701_v40 = vsel %vm690_vm1, %v665_v30, 0 }
   0xc   :  { %v141_v41 = vand.u32 4294901760, %v140_v34  ;;  %1955 = vmatprep.subr.mxu1 %v210_v37  ;;  %v151_v43 = vand.u32 4294901760, %v150_v38  ;;  %687 = vperm.xlu0 %2159, %v669_v36   ;;  %v2318_v52 = vand.u32 4294901760, %v692_v51 }
   0xd   :  { %1956 = vmatpush3.msra.mxu1 %v210_v37  ;;  %v171_v45 = vand.u32 4294901760, %v170_v42  ;;  %682 = vperm.xlu1 %2160, %v668_v47  }
   0xe   :  { %1949 = vmatprep.mubr.f32.mxu0 %v141_v41  ;;  %1957 = vmatprep.subr.mxu1 %v217_v39  ;;  %v2321_v53 = vsub.f32 %v692_v51, %v2318_v52  ;;  %v2347_v51 = vand.u32 4294901760, %v701_v40 }
   0xf   :  { %1950 = vmatmul.mubr.f32.vlgmr.msra.gmra.mxu0 %v151_v43  ;;  %1958 = vmatpush3.msra.mxu1 %v217_v39 }
  0x10   :  { %1966 = vmatpush3.msra.mxu0 %v207_v15  ;;  %1960 = vmatmul.mubr.f32.vlgmr.msra.gmra.mxu1 %v2256_v16  ;;  %v774_v54 = vand.u32 4294901760, %v2321_v53 }
  0x11   :  { %1975 = vmatprep.subr.mxu1 %v2236_v3  ;;  %1952 = vmatprep.mubr.f32.mxu0 %v161_v44 }
  0x12   :  { %1976 = vmatpush3.msra.mxu1 %v2236_v3  ;;  %1967 = vmatprep.subr.mxu0 %v214_v17  ;;  %v775_v55 = vsub.f32 %v2321_v53, %v774_v54 }
  0x13   :  { %1953 = vmatmul.mubr.f32.gmra.mxu0 %v171_v45  ;;  %1962 = vmatprep.mubr.f32.mxu1 %v2259_v18 }
  0x14   :  { %1968 = vmatpush3.msra.mxu0 %v214_v17  ;;  %1963 = vmatmul.mubr.f32.gmra.mxu1 %v2267_v21  ;;  %v776_v56 = vand.u32 4294901760, %v775_v55 }
  0x15   :  { %1977 = vmatprep.subr.mxu1 %v2238_v4  ;;  %1969 = vmatprep.mubr.f32.mxu0 %v138_v20  ;;  %v695_v20 = vsel %vm690_vm1, %v663_v12, 0 }
  0x16   :  { %1978 = vmatpush3.msra.mxu1 %v2238_v4  ;;  %1985 = vmatprep.subr.mxu0 %v208_v23  ;;  %v2335_v29 = vand.u32 4294901760, %v695_v20 }
  0x17   :  { %1970 = vmatmul.mubr.f32.vlgmr.msra.gmra.mxu0 %v148_v24  ;;  %1979 = vmatprep.mubr.f32.mxu1 %v139_v27 }
  0x18   :  { %1986 = vmatpush3.msra.mxu0 %v208_v23  ;;  %1980 = vmatmul.mubr.f32.vlgmr.msra.gmra.mxu1 %v149_v31  ;;  %v664_v23 = vld [vmem:[%s2511_s3 + $0x10] sm:$0xff]  ;;  %v2343_v43 = vsub.f32 %v695_v20, %v2335_v29 }
  0x19   :  { %1995 = vmatprep.subr.mxu1 %v2236_v3  ;;  %1972 = vmatprep.mubr.f32.mxu0 %v158_v26  ;;  %v698_v34 = vsel %vm690_vm1, %v664_v23, 0 }
  0x1a   :  { %1996 = vmatpush3.msra.mxu1 %v2236_v3  ;;  %1987 = vmatprep.subr.mxu0 %v215_v25  ;;  %v2345_v44 = vand.u32 4294901760, %v698_v34 }
  0x1b   :  { %1973 = vmatmul.mubr.f32.gmra.mxu0 %v168_v28  ;;  %1982 = vmatprep.mubr.f32.mxu1 %v159_v33 }
  0x1c   :  { %1988 = vmatpush3.msra.mxu0 %v215_v25  ;;  %1983 = vmatmul.mubr.f32.gmra.mxu1 %v169_v35 }
  0x1d   :  { %1997 = vmatprep.subr.mxu1 %v2238_v4  ;;  %1989 = vmatprep.mubr.f32.mxu0 %v2249_v10 }
  0x1e   :  { %1998 = vmatpush3.msra.mxu1 %v2238_v4  ;;  %1999 = vmatprep.mubr.f32.mxu1 %v2249_v10 }
  0x1f   :  { %1990 = vmatmul.mubr.f32.vlgmr.msra.gmra.mxu0 %v2256_v16  ;;  %677 = vperm.xlu0 %2159, %v667_v46  }
  0x20   :  { %1992 = vmatprep.mubr.f32.mxu0 %v2259_v18  ;;  %2000 = vmatmul.mubr.f32.vlgmr.msra.gmra.mxu1 %v2256_v16 }
  0x21   :  { %2002 = vmatprep.mubr.f32.mxu1 %v2259_v18  ;;  %672 = vperm.xlu1 %2160, %v666_v49  }
  0x23   :  { %1993 = vmatmul.mubr.f32.gmra.mxu0 %v2267_v21  ;;  %1325 = vperm.xlu0 %2159, %v1322_v48  }
  0x24   :  { %2003 = vmatmul.mubr.f32.gmra.mxu1 %v2267_v21  ;;  %2013 = vmatprep.mubr.f32.mxu0 %v776_v56 }
  0x25   :  { %2027 = vmatprep.mubr.f32.mxu1 %v2318_v52 }
  0x7f   :  { %v55_v61 = vpop.permute.xlu0 %54 }
  0x80   :  { %v45_v57 = vpop.permute.xlu1 %44 }
  0x83   :  { %v50_v7 = vpop.permute.xlu0 %49 }
  0x84   :  { %v40_v62 = vpop.permute.xlu1 %39 }
  0xcf   :  { %v1951_v58 = vpop.f32.mrf.mxu0 }
  0xd0   :  { %v1961_v60 = vpop.f32.mrf.mxu1  ;;  %v154_v1 = vadd.f32 %v1951_v58, %v45_v57 }
  0xd1   :  { %v143_v59 = vpop.f32.mrf.mxu0 }
  0xd2   :  { %v254_v0 = vpop.f32.mrf.mxu1  ;;  %v144_v4 = vadd.f32 %v143_v59, %v40_v62  ;;  %v261_v8 = vadd.f32 %v1961_v60, %v154_v1  ;;  %v2352_v60 = vsub.f32 %v698_v34, %v2345_v44  ;;  %v2358_v1 = vsub.f32 %v701_v40, %v2347_v51 }
  0xd3   :  { %v1954_v63 = vpop.f32.mrf.mxu0 }
  0xd4   :  { %v1964_v3 = vpop.f32.mrf.mxu1  ;;  %v174_v9 = vadd.f32 %v1954_v63, %v55_v61  ;;  %v255_v13 = vadd.f32 %v254_v0, %v144_v4  ;;  %v784_v63 = vand.u32 4294901760, %v2343_v43 }
  0xd5   :  { %v163_v2 = vpop.f32.mrf.mxu0 }
  0xd6   :  { %v266_v5 = vpop.f32.mrf.mxu1  ;;  %v164_v14 = vadd.f32 %v163_v2, %v50_v7  ;;  %v273_v18 = vadd.f32 %v1964_v3, %v174_v9 }
  0xd7   :  { %v1971_v6 = vpop.f32.mrf.mxu0 }
  0xd8   :  { %v1981_v11 = vpop.f32.mrf.mxu1  ;;  %v356_v15 = vadd.f32 %v1971_v6, %v261_v8  ;;  %v267_v24 = vadd.f32 %v266_v5, %v164_v14  ;;  %v794_v5 = vand.u32 4294901760, %v2352_v60  ;;  %v785_v8 = vsub.f32 %v2343_v43, %v784_v63 }
  0xd9   :  { %v348_v10 = vpop.f32.mrf.mxu0 }
  0xda   :  { %v444_v17 = vpop.f32.mrf.mxu1  ;;  %v349_v19 = vadd.f32 %v348_v10, %v255_v13  ;;  %v453_v25 = vadd.f32 %v1981_v11, %v356_v15  ;;  %v804_v10 = vand.u32 4294901760, %v2358_v1  ;;  %v795_v13 = vsub.f32 %v2352_v60, %v794_v5 }
  0xdb   :  { %v1974_v16 = vpop.f32.mrf.mxu0  ;;  %v786_v15 = vand.u32 4294901760, %v785_v8 }
  0xdc   :  { %v1984_v22 = vpop.f32.mrf.mxu1  ;;  %v370_v26 = vadd.f32 %v1974_v16, %v273_v18  ;;  %v445_v31 = vadd.f32 %v444_v17, %v349_v19  ;;  %v805_v18 = vsub.f32 %v2358_v1, %v804_v10 }
  0xdd   :  { %v362_v21 = vpop.f32.mrf.mxu0 }
  0xde   :  { %v460_v27 = vpop.f32.mrf.mxu1  ;;  %v363_v32 = vadd.f32 %v362_v21, %v267_v24  ;;  %v469_v37 = vadd.f32 %v1984_v22, %v370_v26  ;;  %v796_v22 = vand.u32 4294901760, %v795_v13 }
  0xdf   :  { %v1991_v28 = vpop.f32.mrf.mxu0 }
  0xe0   :  { %v552_v33 = vadd.f32 %v1991_v28, %v453_v25  ;;  %v2001_v36 = vpop.f32.mrf.mxu1  ;;  %v461_v45 = vadd.f32 %v460_v27, %v363_v32  ;;  %v806_v25 = vand.u32 4294901760, %v805_v18  ;;  %v688_v32 = vpop.permute.xlu0 %687 }
  0xe1   :  { %v545_v35 = vpop.f32.mrf.mxu0 }
  0xe2   :  { %v546_v38 = vadd.f32 %v545_v35, %v445_v31  ;;  %v643_v39 = vadd.f32 %v2001_v36, %v552_v33  ;;  %v636_v42 = vpop.f32.mrf.mxu1  ;;  %v683_v35 = vpop.permute.xlu1 %682 }
  0xe3   :  { %v1994_v41 = vpop.f32.mrf.mxu0 }
  0xe4   :  { %v659_v46 = vmax.f32 %v643_v39, 0.0  ;;  %v564_v47 = vadd.f32 %v1994_v41, %v469_v37  ;;  %v637_v48 = vadd.f32 %v636_v42, %v546_v38  ;;  %v2004_v50 = vpop.f32.mrf.mxu1  ;;  %v678_v38 = vpop.permute.xlu0 %677 }
  0xe5   :  { %v557_v49 = vpop.f32.mrf.mxu0 }
  0xe6   :  { %v658_v55 = vmax.f32 %v637_v48, 0.0  ;;  %v558_v56 = vadd.f32 %v557_v49, %v461_v45  ;;  %v655_v57 = vadd.f32 %v2004_v50, %v564_v47  ;;  %v2349_v58 = vand.u32 4294901760, %v659_v46  ;;  %v648_v59 = vpop.f32.mrf.mxu1  ;;  %v673_v41 = vpop.permute.xlu1 %672  ;;  %v1321_v49 = vld [vmem:[%s2513_s5] sm:$0xf]  ;;  %s2186_s5 = smov [#allocation2]  }
  0xe7   :  { %s1823_s0 = sshll.u32 %s2186_s5, 4  ;;  %s1824_s0 = int_to_ptr.vmem [resolvable:$true] %s1823_s0 }
  0xe8   :  { %v661_v61 = vmax.f32 %v655_v57, 0.0  ;;  %v649_v62 = vadd.f32 %v648_v59, %v558_v56  ;;  %v2355_v0 = vand.u32 4294901760, %v658_v55  ;;  %v852_v4 = vsub.f32 %v659_v46, %v2349_v58  ;;  %s2161_s12 = scalar_lea.vmem %s1824_s0, 64  ;;  %p2166_p1 = scmp.lt.s32.totalorder %s1824_s0, %s1824_s0 }
  0xe9   :  { %p2162_p0 = scmp.ne.s32.totalorder %s1824_s0, %s2161_s12  ;;  %p2167_p2 = scmp.lt.s32.totalorder %s2161_s12, %s2161_s12 }
  0xea   :  { %v2360_v2 = vand.u32 4294901760, %v661_v61  ;;  %v660_v3 = vmax.f32 %v649_v62, 0.0  ;;  %v859_v9 = vsub.f32 %v658_v55, %v2355_v0  ;;  %v853_v14 = vand.u32 4294901760, %v852_v4 }
  0xeb   :  { %v1329_v62 = vsel %vm690_vm1, %v1321_v49, 0  ;;  %p2168_p3 = por %p2167_p2, %p2166_p1 }
  0xec   :  { %v838_v6 = vsub.f32 %v661_v61, %v2360_v2  ;;  %v2365_v7 = vand.u32 4294901760, %v660_v3  ;;  %2005 = vmatprep.subr.mxu0 %v2360_v2  ;;  %v860_v19 = vand.u32 4294901760, %v859_v9  ;;  %v854_v23 = vsub.f32 %v852_v4, %v853_v14 }
  0xed   :  { %2006 = vmatpush3.msra.mxu0 %v2360_v2  ;;  %p2169_p4 = pnand %p2168_p3, %p2162_p0 }
  0xee   :  { %v845_v11 = vsub.f32 %v660_v3, %v2365_v7  ;;  %2007 = vmatprep.subr.mxu0 %v2365_v7  ;;  %v839_v12 = vand.u32 4294901760, %v838_v6  ;;  %v861_v26 = vsub.f32 %v859_v9, %v860_v19  ;;  %v855_v27 = vand.u32 4294901760, %v854_v23 }
  0xef   :  { %2008 = vmatpush3.msra.mxu0 %v2365_v7 }
  0xf0   :  { %2009 = vmatprep.subr.mxu0 %v2349_v58  ;;  %v840_v16 = vsub.f32 %v838_v6, %v839_v12  ;;  %v846_v17 = vand.u32 4294901760, %v845_v11  ;;  %v862_v28 = vand.u32 4294901760, %v861_v26 }
  0xf1   :  { %2010 = vmatpush3.msra.mxu0 %v2349_v58 }
  0xf2   :  { %2011 = vmatprep.subr.mxu0 %v2355_v0  ;;  %v841_v20 = vand.u32 4294901760, %v840_v16  ;;  %v847_v21 = vsub.f32 %v845_v11, %v846_v17 }
  0xf3   :  { %2012 = vmatpush3.msra.mxu0 %v2355_v0 }
  0xf4   :  { %2014 = vmatmul.mubr.f32.vlgmr.msra.gmra.mxu0 %v786_v15  ;;  %2019 = vmatprep.subr.mxu1 %v841_v20  ;;  %v848_v24 = vand.u32 4294901760, %v847_v21 }
  0xf5   :  { %2033 = vmatprep.subr.mxu0 %v838_v6  ;;  %2020 = vmatpush3.msra.mxu1 %v841_v20 }
  0xf6   :  { %2034 = vmatpush3.msra.mxu0 %v838_v6  ;;  %2021 = vmatprep.subr.mxu1 %v848_v24 }
  0xf7   :  { %2035 = vmatprep.subr.mxu0 %v845_v11  ;;  %2016 = vmatprep.mubr.f32.mxu0 %v796_v22 }
  0xf8   :  { %2022 = vmatpush3.msra.mxu1 %v848_v24  ;;  %2036 = vmatpush3.msra.mxu0 %v845_v11 }
  0xf9   :  { %2017 = vmatmul.mubr.f32.gmra.mxu0 %v806_v25  ;;  %2023 = vmatprep.subr.mxu1 %v855_v27 }
  0xfa   :  { %2037 = vmatprep.subr.mxu0 %v852_v4  ;;  %2024 = vmatpush3.msra.mxu1 %v855_v27 }
  0xfb   :  { %2038 = vmatpush3.msra.mxu0 %v852_v4  ;;  %2025 = vmatprep.subr.mxu1 %v862_v28  ;;  %v2436_v4 = vand.u32 4294901760, %v1329_v62 }
  0xfc   :  { %2039 = vmatprep.subr.mxu0 %v859_v9  ;;  %2026 = vmatpush3.msra.mxu1 %v862_v28 }
  0xfd   :  { %2040 = vmatpush3.msra.mxu0 %v859_v9  ;;  %2028 = vmatmul.mubr.f32.vlgmr.msra.gmra.mxu1 %v2335_v29 }
  0xfe   :  { %2041 = vmatprep.mubr.f32.mxu0 %v2321_v53  ;;  %2047 = vmatprep.subr.mxu1 %v2360_v2  ;;  %v2184_v53 = vmov 0.0  }
  0xff   :  { %2061 = vmatprep.subr.mxu0 %v839_v12  ;;  %2042 = vmatmul.mubr.f32.vlgmr.msra.gmra.mxu0 %v2343_v43 }
 0x100   :  { %2048 = vmatpush3.msra.mxu1 %v2360_v2  ;;  %2062 = vmatpush3.msra.mxu0 %v839_v12 }
 0x101   :  { %2049 = vmatprep.subr.mxu1 %v2365_v7  ;;  %2063 = vmatprep.subr.mxu0 %v846_v17 }
 0x102   :  { %2030 = vmatprep.mubr.f32.mxu1 %v2345_v44  ;;  %2050 = vmatpush3.msra.mxu1 %v2365_v7 }
 0x103   :  { %2064 = vmatpush3.msra.mxu0 %v846_v17  ;;  %2031 = vmatmul.mubr.f32.gmra.mxu1 %v2347_v51 }
 0x104   :  { %2051 = vmatprep.subr.mxu1 %v2349_v58  ;;  %2065 = vmatprep.subr.mxu0 %v853_v14 }
 0x105   :  { %2044 = vmatprep.mubr.f32.mxu0 %v2352_v60  ;;  %2052 = vmatpush3.msra.mxu1 %v2349_v58 }
 0x106   :  { %2066 = vmatpush3.msra.mxu0 %v853_v14  ;;  %2053 = vmatprep.subr.mxu1 %v2355_v0  ;;  %v2439_v14 = vsub.f32 %v1329_v62, %v2436_v4 }
 0x107   :  { %2045 = vmatmul.mubr.f32.gmra.mxu0 %v2358_v1  ;;  %2067 = vmatprep.subr.mxu0 %v860_v19 }
 0x108   :  { %2054 = vmatpush3.msra.mxu1 %v2355_v0  ;;  %2055 = vmatprep.mubr.f32.mxu1 %v774_v54  ;;  %v1402_v24 = vand.u32 4294901760, %v2439_v14 }
 0x109   :  { %2068 = vmatpush3.msra.mxu0 %v860_v19  ;;  %2056 = vmatmul.mubr.f32.vlgmr.msra.gmra.mxu1 %v784_v63 }
 0x10a   :  { %2075 = vmatprep.subr.mxu1 %v2360_v2  ;;  %2069 = vmatprep.mubr.f32.mxu0 %v2318_v52 }
 0x10b   :  { %2076 = vmatpush3.msra.mxu1 %v2360_v2  ;;  %2070 = vmatmul.mubr.f32.vlgmr.msra.gmra.mxu0 %v2335_v29 }
 0x10c   :  { %2077 = vmatprep.subr.mxu1 %v2365_v7  ;;  %2058 = vmatprep.mubr.f32.mxu1 %v794_v5 }
 0x10d   :  { %2078 = vmatpush3.msra.mxu1 %v2365_v7  ;;  %2072 = vmatprep.mubr.f32.mxu0 %v2345_v44 }
 0x10e   :  { %2059 = vmatmul.mubr.f32.gmra.mxu1 %v804_v10  ;;  %2079 = vmatprep.subr.mxu1 %v2349_v58 }
 0x10f   :  { %2080 = vmatpush3.msra.mxu1 %v2349_v58  ;;  %2073 = vmatmul.mubr.f32.gmra.mxu0 %v2347_v51 }
 0x110   :  { %2081 = vmatprep.subr.mxu1 %v2355_v0  ;;  %2083 = vmatprep.mubr.f32.mxu1 %v2318_v52 }
 0x111   :  { %2082 = vmatpush3.msra.mxu1 %v2355_v0  ;;  %2089 = vmatprep.subr.mxu0 %v2184_v53 }
 0x112   :  { %2084 = vmatmul.mubr.f32.vlgmr.msra.gmra.mxu1 %v2335_v29  ;;  %2100 = vmatprep.subr.mxu1 %v2184_v53 }
 0x113   :  { %2086 = vmatprep.mubr.f32.mxu1 %v2345_v44  ;;  %2097 = vmatprep.mubr.msk.f32.mxu0 %vm2185_vm2, %v2184_v53 }
 0x116   :  { %2087 = vmatmul.mubr.f32.gmra.mxu1 %v2347_v51 }
 0x117   :  { %2108 = vmatprep.mubr.msk.f32.mxu1 %vm2185_vm2, %v2184_v53 }
 0x1b4   :  { %v2015_v52 = vpop.f32.mrf.mxu0 }
 0x1b5   :  { %v789_v39 = vadd.f32 %v2015_v52, %v678_v38 }
 0x1b6   :  { %v778_v54 = vpop.f32.mrf.mxu0 }
 0x1b7   :  { %v779_v42 = vadd.f32 %v778_v54, %v673_v41 }
 0x1b9   :  { %v2018_v30 = vpop.f32.mrf.mxu0 }
 0x1ba   :  { %v809_v45 = vadd.f32 %v2018_v30, %v688_v32  ;;  %v1403_v30 = vsub.f32 %v2439_v14, %v1402_v24 }
 0x1bb   :  { %v798_v29 = vpop.f32.mrf.mxu0 }
 0x1bc   :  { %v799_v50 = vadd.f32 %v798_v29, %v683_v35 }
 0x1bd   :  { %v2029_v31 = vpop.f32.mrf.mxu1 }
 0x1be   :  { %v906_v43 = vadd.f32 %v2029_v31, %v789_v39 }
 0x1bf   :  { %v899_v33 = vpop.f32.mrf.mxu1  ;;  %v2043_v34 = vpop.f32.mrf.mxu0 }
 0x1c0   :  { %v900_v46 = vadd.f32 %v899_v33, %v779_v42  ;;  %v1005_v51 = vadd.f32 %v2043_v34, %v906_v43 }
 0x1c1   :  { %v997_v37 = vpop.f32.mrf.mxu0 }
 0x1c2   :  { %v998_v58 = vadd.f32 %v997_v37, %v900_v46 }
 0x1c3   :  { %v2032_v36 = vpop.f32.mrf.mxu1 }
 0x1c4   :  { %v918_v55 = vadd.f32 %v2032_v36, %v809_v45  ;;  %v1404_v36 = vand.u32 4294901760, %v1403_v30 }
 0x1c5   :  { %v911_v40 = vpop.f32.mrf.mxu1 }
 0x1c6   :  { %v912_v59 = vadd.f32 %v911_v40, %v799_v50 }
 0x1c7   :  { %v2046_v44 = vpop.f32.mrf.mxu0 }
 0x1c8   :  { %v1019_v0 = vadd.f32 %v2046_v44, %v918_v55  ;;  %v1326_v55 = vpop.permute.xlu0 %1325 }
 0x1c9   :  { %v1011_v47 = vpop.f32.mrf.mxu0  ;;  %v2057_v48 = vpop.f32.mrf.mxu1 }
 0x1ca   :  { %v1104_v60 = vadd.f32 %v2057_v48, %v1005_v51  ;;  %v1012_v5 = vadd.f32 %v1011_v47, %v912_v59 }
 0x1cb   :  { %v1095_v56 = vpop.f32.mrf.mxu1  ;;  %v2071_v57 = vpop.f32.mrf.mxu0 }
 0x1cc   :  { %v1096_v1 = vadd.f32 %v1095_v56, %v998_v58  ;;  %v1209_v6 = vadd.f32 %v2071_v57, %v1104_v60 }
 0x1cd   :  { %v1202_v61 = vpop.f32.mrf.mxu0 }
 0x1ce   :  { %v2060_v63 = vpop.f32.mrf.mxu1  ;;  %v1203_v9 = vadd.f32 %v1202_v61, %v1096_v1 }
 0x1cf   :  { %v2074_v3 = vpop.f32.mrf.mxu0  ;;  %v1120_v7 = vadd.f32 %v2060_v63, %v1019_v0 }
 0x1d0   :  { %v1111_v2 = vpop.f32.mrf.mxu1 }
 0x1d1   :  { %v1112_v10 = vadd.f32 %v1111_v2, %v1012_v5  ;;  %v1214_v12 = vpop.f32.mrf.mxu0  ;;  %v1221_v15 = vadd.f32 %v2074_v3, %v1120_v7 }
 0x1d2   :  { %v2085_v8 = vpop.f32.mrf.mxu1 }
 0x1d3   :  { %v1302_v11 = vadd.f32 %v2085_v8, %v1209_v6  ;;  %v1215_v19 = vadd.f32 %v1214_v12, %v1112_v10 }
 0x1d4   :  { %v1295_v13 = vpop.f32.mrf.mxu1 }
 0x1d5   :  { %v1318_v16 = vmax.f32 %v1302_v11, 0.0  ;;  %v1296_v17 = vadd.f32 %v1295_v13, %v1203_v9 }
 0x1d6   :  { %v2088_v18 = vpop.f32.mrf.mxu1 }
 0x1d7   :  { %v2441_v20 = vand.u32 4294901760, %v1318_v16  ;;  %v1317_v21 = vmax.f32 %v1296_v17, 0.0  ;;  %v1314_v22 = vadd.f32 %v2088_v18, %v1221_v15 }
 0x1d8   :  { %v1307_v23 = vpop.f32.mrf.mxu1 }
 0x1d9   :  { %v2444_v25 = vand.u32 4294901760, %v1317_v21  ;;  %v1320_v26 = vmax.f32 %v1314_v22, 0.0  ;;  %v1308_v27 = vadd.f32 %v1307_v23, %v1215_v19  ;;  %v1450_v28 = vsub.f32 %v1318_v16, %v2441_v20 }
 0x1db   :  { %v2447_v52 = vand.u32 4294901760, %v1320_v26  ;;  %v1319_v54 = vmax.f32 %v1308_v27, 0.0  ;;  %v1457_v29 = vsub.f32 %v1317_v21, %v2444_v25  ;;  %v1451_v33 = vand.u32 4294901760, %v1450_v28 }
 0x1dd   :  { %v1436_v31 = vsub.f32 %v1320_v26, %v2447_v52  ;;  %v2454_v32 = vand.u32 4294901760, %v1319_v54  ;;  %2090 = vmatpush3.msra.mxu0 %v2447_v52  ;;  %v1458_v37 = vand.u32 4294901760, %v1457_v29  ;;  %v1452_v40 = vsub.f32 %v1450_v28, %v1451_v33 }
 0x1de   :  { %2091 = vmatprep.subr.mxu0 %v2184_v53 }
 0x1df   :  { %v1437_v34 = vand.u32 4294901760, %v1436_v31  ;;  %v1443_v35 = vsub.f32 %v1319_v54, %v2454_v32  ;;  %2092 = vmatpush3.msra.mxu0 %v2454_v32  ;;  %v1459_v43 = vsub.f32 %v1457_v29, %v1458_v37  ;;  %v1453_v45 = vand.u32 4294901760, %v1452_v40 }
 0x1e0   :  { %2093 = vmatprep.subr.mxu0 %v2184_v53 }
 0x1e1   :  { %v1438_v38 = vsub.f32 %v1436_v31, %v1437_v34  ;;  %v1444_v39 = vand.u32 4294901760, %v1443_v35  ;;  %2094 = vmatpush3.msra.mxu0 %v2441_v20  ;;  %v1460_v46 = vand.u32 4294901760, %v1459_v43 }
 0x1e2   :  { %2095 = vmatprep.subr.mxu0 %v2184_v53 }
 0x1e3   :  { %v1445_v41 = vsub.f32 %v1443_v35, %v1444_v39  ;;  %2096 = vmatpush3.msra.mxu0 %v2444_v25  ;;  %v1439_v42 = vand.u32 4294901760, %v1438_v38 }
 0x1e4   :  { %2098 = vmatmul.mubr.f32.vlgmr.msra.gmra.mxu0 %v1404_v36  ;;  %2111 = vmatprep.subr.mxu0 %v2184_v53 }
 0x1e5   :  { %2101 = vmatpush3.msra.mxu1 %v1439_v42  ;;  %2112 = vmatpush3.msra.mxu0 %v1436_v31  ;;  %v1446_v44 = vand.u32 4294901760, %v1445_v41 }
 0x1e6   :  { %2102 = vmatprep.subr.mxu1 %v2184_v53  ;;  %2113 = vmatprep.subr.mxu0 %v2184_v53 }
 0x1e7   :  { %2103 = vmatpush3.msra.mxu1 %v1446_v44  ;;  %2114 = vmatpush3.msra.mxu0 %v1443_v35 }
 0x1e8   :  { %2104 = vmatprep.subr.mxu1 %v2184_v53  ;;  %2115 = vmatprep.subr.mxu0 %v2184_v53 }
 0x1e9   :  { %2105 = vmatpush3.msra.mxu1 %v1453_v45  ;;  %2116 = vmatpush3.msra.mxu0 %v1450_v28 }
 0x1ea   :  { %2106 = vmatprep.subr.mxu1 %v2184_v53  ;;  %2117 = vmatprep.subr.mxu0 %v2184_v53 }
 0x1eb   :  { %2107 = vmatpush3.msra.mxu1 %v1460_v46  ;;  %2118 = vmatpush3.msra.mxu0 %v1457_v29 }
 0x1ec   :  { %2109 = vmatmul.mubr.f32.vlgmr.msra.gmra.mxu1 %v2436_v4  ;;  %2119 = vmatprep.mubr.msk.f32.mxu0 %vm2185_vm2, %v2184_v53 }
 0x1ed   :  { %2122 = vmatprep.subr.mxu1 %v2184_v53  ;;  %2133 = vmatprep.subr.mxu0 %v2184_v53 }
 0x1ee   :  { %2120 = vmatmul.mubr.f32.vlgmr.msra.gmra.mxu0 %v2439_v14  ;;  %2123 = vmatpush3.msra.mxu1 %v2447_v52 }
 0x1ef   :  { %2134 = vmatpush3.msra.mxu0 %v1437_v34  ;;  %2124 = vmatprep.subr.mxu1 %v2184_v53 }
 0x1f0   :  { %2135 = vmatprep.subr.mxu0 %v2184_v53  ;;  %2125 = vmatpush3.msra.mxu1 %v2454_v32 }
 0x1f1   :  { %2136 = vmatpush3.msra.mxu0 %v1444_v39  ;;  %2126 = vmatprep.subr.mxu1 %v2184_v53 }
 0x1f2   :  { %2137 = vmatprep.subr.mxu0 %v2184_v53  ;;  %2127 = vmatpush3.msra.mxu1 %v2441_v20 }
 0x1f3   :  { %2138 = vmatpush3.msra.mxu0 %v1451_v33  ;;  %2128 = vmatprep.subr.mxu1 %v2184_v53 }
 0x1f4   :  { %2139 = vmatprep.subr.mxu0 %v2184_v53  ;;  %2129 = vmatpush3.msra.mxu1 %v2444_v25 }
 0x1f5   :  { %2130 = vmatprep.mubr.msk.f32.mxu1 %vm2185_vm2, %v2184_v53  ;;  %2140 = vmatpush3.msra.mxu0 %v1458_v37 }
 0x1f6   :  { %2131 = vmatmul.mubr.f32.vlgmr.msra.gmra.mxu1 %v1402_v24  ;;  %2144 = vmatprep.subr.mxu1 %v2184_v53 }
 0x1f7   :  { %2141 = vmatprep.mubr.msk.f32.mxu0 %vm2185_vm2, %v2184_v53  ;;  %2145 = vmatpush3.msra.mxu1 %v2447_v52 }
 0x1f8   :  { %2142 = vmatmul.mubr.f32.vlgmr.msra.gmra.mxu0 %v2436_v4  ;;  %2146 = vmatprep.subr.mxu1 %v2184_v53 }
 0x1f9   :  { %2147 = vmatpush3.msra.mxu1 %v2454_v32  ;;  %2152 = vmatprep.mubr.msk.f32.mxu1 %vm2185_vm2, %v2184_v53 }
 0x1fa   :  { %2148 = vmatprep.subr.mxu1 %v2184_v53 }
 0x1fb   :  { %2149 = vmatpush3.msra.mxu1 %v2441_v20 }
 0x1fc   :  { %2150 = vmatprep.subr.mxu1 %v2184_v53 }
 0x1fd   :  { %2151 = vmatpush3.msra.mxu1 %v2444_v25 }
 0x1fe   :  { %2153 = vmatmul.mubr.f32.vlgmr.msra.gmra.mxu1 %v2436_v4 }
 0x2a4   :  { %v1406_v47 = vpop.f32.mrf.mxu0 }
 0x2a5   :  { %v1407_v57 = vadd.f32 %v1406_v47, %v1326_v55 }
 0x2a6   :  { %v2099_v48 = vpop.f32.mrf.mxu0 }
 0x2ac   :  { %v1497_v49 = vpop.f32.mrf.mxu1 }
 0x2ad   :  { %v1498_v58 = vadd.f32 %v1497_v49, %v1407_v57 }
 0x2ae   :  { %v2110_v50 = vpop.f32.mrf.mxu1  ;;  %v1577_v51 = vpop.f32.mrf.mxu0 }
 0x2af   :  { %v1578_v60 = vadd.f32 %v1577_v51, %v1498_v58 }
 0x2b0   :  { %v2121_v56 = vpop.f32.mrf.mxu0 }
 0x2b6   :  { %v1654_v59 = vpop.f32.mrf.mxu1 }
 0x2b7   :  { %v1655_v63 = vadd.f32 %v1654_v59, %v1578_v60 }
 0x2b8   :  { %v2132_v61 = vpop.f32.mrf.mxu1  ;;  %v1737_v62 = vpop.f32.mrf.mxu0 }
 0x2b9   :  { %v1738_v53 = vadd.f32 %v1737_v62, %v1655_v63 }
 0x2ba   :  { %v2143_v0 = vpop.f32.mrf.mxu0 }
 0x2be   :  { %v1812_v1 = vpop.f32.mrf.mxu1 }
 0x2bf   :  { %v1813_v2 = vadd.f32 %v1812_v1, %v1738_v53 }
 0x2c0   :  { %v2154_v3 = vpop.f32.mrf.mxu1 }
 0x2c1   :  { %1816 = vst [vmem:[#allocation2] sm:$0xf] %v1813_v2 }
 0x2c2   :  { %2172 = shalt.err (!%p2169_p4)
}
 0x2c3   :  { %1826 = dma.vmem_to_hbm [thread:$0]  %s1824_s0, 64, %s2515_s7, [#allocation3]  }
 0x2c4   :  { %2181 = dma.done.wait [#allocation3], 64  }
 0x2c5   :  { %2182 = vsyncadd [#allocation3], 4294967232 }
 0x2c6   :  { %1830 = vsyncpa [#allocation3], 1 }

</bundles_post_ra>
